<compile_context>
chip_gen: v6e
topology: v6e:2x2x1
jax: 0.10.0
libtpu: 0.0.40
codegen_flags: <defaults>
</compile_context>

<pallas_src>
import jax
import jax.numpy as jnp
from jax.experimental import pallas as pl
from jax.experimental.pallas import tpu as pltpu

_LANES = 128                    # TPU lane width
_COORD = 3                      # xyz
_ROW = _COORD * _LANES          # 384 = one lane-dense row (128 points)
_TM_MAX = 2048                  # rows/block -> 3 MiB block (f32), ~12 MiB pipelined
_SMALL_N_POINTS = 32768         # below this a fused XLA add beats a kernel launch
_SUBLANE = {4: 8, 2: 16, 1: 32}  # minimum sublane tile per dtype itemsize


def _bound_transform_kernel(x_ref, t_ref, o_ref):
    # x_ref: (TM, 384), t_ref: (1, 384) -> sublane-broadcast add on the VPU.
    o_ref[...] = x_ref[...] + t_ref[...]


def bound_transform(x, translation, *, force_pallas=False):
    """BoundTransform.forward: x (..., 3) -> x + translation (3,)."""
    assert x.shape[-1] == _COORD, "last dim must be 3"
    # NOTE: translation is cast to x.dtype (PyTorch would promote bf16 x to f32).
    t = translation.astype(x.dtype)

    n_points = x.size // _COORD
    if not force_pallas and n_points < _SMALL_N_POINTS:
        return x + t                      # launch overhead dominates at small sizes

    orig_shape = x.shape
    flat = x.reshape(-1)                  # row-major: x0 y0 z0 x1 y1 z1 ...
    total = flat.shape[0]

    m = total // _ROW                     # whole lane-dense rows
    rem = total - m * _ROW                # ragged tail (< 384 elems, multiple of 3)

    itemsize = jnp.dtype(x.dtype).itemsize
    sublane = _SUBLANE.get(itemsize, 8)
    if m < sublane:
        return x + t                      # too few rows for a well-formed tile

    # Aligned prefix: zero-copy view when rem == 0.
    prefix = flat[: m * _ROW].reshape(m, _ROW)

    # translation tiled with the same x,y,z,x,y,z,... period as the flat data.
    t_row = jnp.tile(t, _LANES).reshape(1, _ROW)

    # >=2 grid steps when possible (v7x megacore), dtype-aware sublane multiple,
    # capped so double-buffered in+out blocks stay ~12 MiB.
    tm = min(_TM_MAX, pl.cdiv(m, 2))
    tm = pl.cdiv(tm, sublane) * sublane
    tm = min(tm, m)
    grid = (pl.cdiv(m, tm),)

    cost = pl.CostEstimate(
        flops=m * _ROW,
        transcendentals=0,
        bytes_accessed=2 * m * _ROW * itemsize + _ROW * itemsize,
    )

    out2d = pl.pallas_call(
        _bound_transform_kernel,
        out_shape=jax.ShapeDtypeStruct((m, _ROW), x.dtype),
        grid=grid,
        in_specs=[
            pl.BlockSpec((tm, _ROW), lambda i: (i, 0)),
            pl.BlockSpec((1, _ROW), lambda i: (0, 0)),
        ],
        out_specs=pl.BlockSpec((tm, _ROW), lambda i: (i, 0)),
        compiler_params=pltpu.CompilerParams(
            dimension_semantics=("parallel",),
            vmem_limit_bytes=32 * 1024 * 1024,
        ),
        cost_estimate=cost,
    )(prefix, t_row)

    out_flat = out2d.reshape(-1)
    if rem:
        # Tail starts at a multiple of 384 (hence of 3): xyz phase is aligned.
        tail = flat[m * _ROW:] + jnp.tile(t, rem // _COORD)
        out_flat = jnp.concatenate([out_flat, tail])
    return out_flat.reshape(orig_shape)


if __name__ == "__main__":
    key = jax.random.PRNGKey(0)
    k1, k2, k3, k4 = jax.random.split(key, 4)

    # Deterministic parameter init, matching nn.Parameter(torch.zeros(3)).
    translation = jnp.zeros((3,), dtype=jnp.float32)
    t_nonzero = jnp.array([0.5, -1.25, 2.0], dtype=jnp.float32)

    # 1) Tiny point-cloud input (batch=2, num_points=8, coords=3): XLA fast path.
    x_small = jax.random.normal(k1, (2, 8, 3), dtype=jnp.float32)
    y_small = jax.block_until_ready(bound_transform(x_small, translation))
    assert y_small.shape == x_small.shape
    assert jnp.allclose(y_small, x_small + translation, atol=1e-6)
    y_small2 = jax.block_until_ready(bound_transform(x_small, t_nonzero))
    assert jnp.allclose(y_small2, x_small + t_nonzero, atol=1e-6)

    # 2) Aligned Pallas path, 2-step grid (v7x megacore split): 2 x 2048 points.
    x_med = jax.random.normal(k2, (2, 2048, 3), dtype=jnp.float32)
    y_med = jax.block_until_ready(
        bound_transform(x_med, t_nonzero, force_pallas=True))
    assert jnp.allclose(y_med, x_med + t_nonzero, atol=1e-6)

    # 3) Ragged tail (N % 128 != 0): prefix kernel (ragged last block) + XLA tail.
    x_odd = jax.random.normal(k3, (3, 1000, 3), dtype=jnp.float32)
    y_odd = jax.block_until_ready(
        bound_transform(x_odd, t_nonzero, force_pallas=True))
    assert jnp.allclose(y_odd, x_odd + t_nonzero, atol=1e-6)

    # 4) Full-TM pipelined grid: 4 x 131072 points -> m=4096, tm=2048, grid=2.
    x_big = jax.random.normal(k4, (4, 131072, 3), dtype=jnp.float32)
    y_big = jax.block_until_ready(
        bound_transform(x_big, t_nonzero, force_pallas=True))
    assert jnp.allclose(y_big, x_big + t_nonzero, atol=1e-6)

    print("KERNEL_OK")
</pallas_src>

<mosaic_0001>
module attributes {stable_mosaic.version = 11 : i64} {
  func.func @_bound_transform_kernel(%arg0: i32, %arg1: memref<16x384xf32, #tpu.memory_space<vmem>>, %arg2: memref<1x384xf32, #tpu.memory_space<vmem>>, %arg3: memref<16x384xf32, #tpu.memory_space<vmem>>) attributes {dimension_semantics = [#tpu.dimension_semantics<parallel>], iteration_bounds = array<i64: 2>, scalar_prefetch = 0 : i64, scratch_operands = 0 : i64, tpu.core_type = #tpu.core_type<tc>, window_params = [{transform_indices = @transform_0, window_bounds = array<i64: 16, 384>}, {pipeline_mode = #tpu.pipeline_mode<synchronous>, transform_indices = @transform_1, window_bounds = array<i64: 1, 384>}, {transform_indices = @transform_2, window_bounds = array<i64: 16, 384>}]} {
    %c0 = arith.constant 0 : index
    %c0_0 = arith.constant 0 : index
    %0 = vector.load %arg1[%c0, %c0_0] : memref<16x384xf32, #tpu.memory_space<vmem>>, vector<16x384xf32>
    %c0_1 = arith.constant 0 : index
    %c0_2 = arith.constant 0 : index
    %1 = vector.load %arg2[%c0_1, %c0_2] : memref<1x384xf32, #tpu.memory_space<vmem>>, vector<1x384xf32>
    %2 = vector.broadcast %1 : vector<1x384xf32> to vector<16x384xf32>
    %3 = arith.addf %0, %2 : vector<16x384xf32>
    %c0_3 = arith.constant 0 : index
    %c0_4 = arith.constant 0 : index
    %4 = vector.load %arg3[%c0_3, %c0_4] : memref<16x384xf32, #tpu.memory_space<vmem>>, vector<16x384xf32>
    tpu.vector_store %arg3[%c0_3, %c0_4], %3 {strides = array<i32>} : memref<16x384xf32, #tpu.memory_space<vmem>>, vector<16x384xf32>,
    return
  }
  func.func @transform_0(%arg0: i32) -> (i32, i32) {
    %c0_i32 = arith.constant 0 : i32
    %c0_i32_0 = arith.constant 0 : i32
    return %arg0, %c0_i32 : i32, i32
  }
  func.func @transform_1(%arg0: i32) -> (i32, i32) {
    %c0_i32 = arith.constant 0 : i32
    %c0_i32_0 = arith.constant 0 : i32
    %c0_i32_1 = arith.constant 0 : i32
    return %c0_i32, %c0_i32_0 : i32, i32
  }
  func.func @transform_2(%arg0: i32) -> (i32, i32) {
    %c0_i32 = arith.constant 0 : i32
    %c0_i32_0 = arith.constant 0 : i32
    return %arg0, %c0_i32 : i32, i32
  }
}

</mosaic_0001>

<bundles_post_ra>
// kernel: tpu_custom_call.1
= control target key start
LH: loop header
LB: loop body
LE: loop exit
PB: predicated region body
PF: predicated region fallthrough
CT: control target
= control target key end

     0   :  { %7 = vsyncpa [#allocation3], 0  ;;  %s717_s0 = inlined_call_operand.hbm [shape: f32[32,384], index: 0, kind: input, shape index: {}]   ;;  %s718_s1 = inlined_call_operand.hbm [shape: f32[1,384], index: 1, kind: input, shape index: {}]   ;;  %s719_s2 = inlined_call_operand.hbm [shape: f32[32,384], index: 2, kind: output, shape index: {}]  }
   0x1   :  { %9 = vsyncpa [#allocation3 + $0x1], 0 }
   0x2   :  { %10 = vsyncpa [#allocation6], 0 }
   0x3   :  { %11 = vsyncpa [#allocation4], 0 }
   0x4   :  { %13 = vsyncpa [#allocation4 + $0x1], 0  ;;  %s536_s9 = smov 0   ;;  %s538_s10 = smov 0  }
   0x5   :  { %s540_s11 = smov 0   ;;  %s542_s12 = smov 0  }
   0x6 LB: > { %s557_s13 = sadd.s32 4294967295, %s512_s12   ;;  %s311_s14 = sadd.s32 4294967294, %s512_s12   ;;  %s512_s12 = sphi %s542_s12, %s742_s12   ;;  %s508_s11 = sphi %s540_s11, %s741_s11   ;;  %s504_s10 = sphi %s538_s10, %s740_s10   ;;  %s500_s9 = sphi %s536_s9, %s739_s9  }
   0x7   : > { %s561_s15 = sadd.s32 1, %s512_s12   ;;  %s26_s16 = sadd.s32 1, %s508_s11 }
   0x8   : > { %s23_s17 = ssub.s32 %s512_s12, %s561_s15  ;;  %p33_p0 = scmp.ne.s32.totalorder %s508_s11, %s504_s10 }
   0x9   : > { %p24_p1 = scmp.eq.s32.totalorder %s23_s17, 0  ;;  %p34_p2 = scmp.eq.s32.totalorder %s512_s12, 0 }
   0xa   : > { %p39_p3 = scmp.ne.s32.totalorder %s504_s10, %s500_s9  ;;  %p720_p4 = scmp.eq.s32.totalorder %s557_s13, 0 }
   0xb   : > { %s573_s18 = scalar_select %p24_p1, %s508_s11, %s26_s16  }
   0xc   : > { %p575_p5 = por %p34_p2, %p33_p0  ;;  %p581_p6 = por %p720_p4, %p39_p3 }
   0xd   : > { %p84_p7 = scmp.eq.s32.totalorder %s557_s13, 1  ;;  %p90_p8 = scmp.eq.s32.totalorder %s311_s14, 1 }
   0xe   : > { %s725_s20 = scalar_select %p581_p6, 1, 0 }
   0xf   : > { %p312_p9 = scmp.ge.s32.totalorder %s512_s12, 1  ;;  %p97_p10 = scmp.lt.s32.totalorder %s512_s12, 3 }
  0x10   : > { %p588_p11 = por %p84_p7, %p33_p0  ;;  %p592_p12 = por %p90_p8, %p39_p3 }
  0x11   : > { %p596_p13 = pnand %p312_p9, %p97_p10  ;;  %s514_s24 = smov [#allocation5]  }
  0x12   : > { %s726_s21 = scalar_select %p588_p11, 1, 0 }
  0x13   : > { %s727_s22 = scalar_select %p592_p12, 1, 0 }
  0x14   : > { %s728_s23 = scalar_select %p596_p13, 1, 0 }
  0x15   : > { %p337_p2 = pneg %p596_p13  ;;  %s110_s25 = sshll.u32 %s514_s24, 4  ;;  %s111_s25 = int_to_ptr.vmem [resolvable:$true] %s110_s25 }
  0x16   : > { %p350_p4 = scmp.lt.s32.totalorder %s512_s12, 2  ;;  %p729_p0 = scmp.eq.s32.totalorder %s557_s13, 0 }
  0x17   : > { %s121_s27 = sand.u32 1, %s508_s11   ;;  %s401_s30 = scalar_lea.vmem %s111_s25, 48 }
  0x18   : > { %p606_p7 = pnand %p337_p2, %p729_p0  ;;  %p613_p3 = pnand %p350_p4, %p575_p5 }
  0x19   : > { %s325_s29 = smul.u32 48, %s121_s27  ;;  %p402_p9 = scmp.ne.s32.totalorder %s111_s25, %s401_s30 }
  0x1a   : > { %p392_p8 = pneg %p606_p7  ;;  %s408_s3 = scalar_lea.vmem %s111_s25, 64 }
  0x1b   : > { %p409_p12 = scmp.lt.s32.totalorder %s111_s25, %s111_s25  ;;  %p410_p2 = scmp.lt.s32.totalorder %s408_s3, %s401_s30 }
  0x1c   : > { %p404_p10 = pnand %p402_p9, %p392_p8 }
  0x1d   : > { %p411_p0 = por %p410_p2, %p409_p12 }
  0x1e   : > { %p405_p1 = pneg %p404_p10 }
  0x20   : > { %p412_p11 = pnand %p411_p0, %p405_p1 }
  0x22   : > { %415 = shalt.err (!%p412_p11)
}
  0x23   : > { %340 = dma.hbm_to_vmem [thread:$0]  (!%p606_p7), %s718_s1, 48, %s111_s25, [#allocation6]  }
  0x24   : > { %s326_s6 = smul.u32 768, %s512_s12  ;;  %s125_s7 = scalar_lea.vmem [#allocation2], %s325_s29 }
  0x25   : > { %s133_s8 = sshll.u32 %s125_s7, 4  ;;  %s632_s19 = scalar_lea.sflag [#allocation3], %s121_s27  ;;  %s625_s8 = int_to_ptr.vmem [resolvable:$true] %s133_s8 }
  0x26   : > { %s630_s17 = scalar_lea.hbm %s717_s0, %s326_s6  ;;  %p418_p5 = pneg %p613_p3 }
  0x27   : > { %s416_s24 = scalar_lea.hbm %s630_s17, 768  ;;  %s421_s29 = scalar_lea.hbm %s717_s0, 1536 }
  0x28   : > { %p417_p4 = scmp.ne.s32.totalorder %s630_s17, %s416_s24  ;;  %p422_p1 = scmp.lt.s32.totalorder %s630_s17, %s717_s0 }
  0x29   : > { %p423_p7 = scmp.lt.s32.totalorder %s421_s29, %s416_s24 }
  0x2a   : > { %p419_p11 = pnand %p418_p5, %p417_p4 }
  0x2b   : > { %p424_p8 = por %p423_p7, %p422_p1 }
  0x2c   : > { %p420_p12 = pneg %p419_p11 }
  0x2e   : > { %p425_p9 = pnand %p424_p8, %p420_p12 }
  0x30   : > { %428 = shalt.err (!%p425_p9)
}
  0x31   : > { %s429_s27 = scalar_lea.vmem %s625_s8, 768  ;;  %s515_s4 = smov [#allocation2]  }
  0x32   : > { %p430_p10 = scmp.ne.s32.totalorder %s625_s8, %s429_s27  ;;  %s434_s5 = sshll.u32 %s515_s4, 4  ;;  %s435_s5 = int_to_ptr.vmem [resolvable:$false] %s434_s5 }
  0x33   : > { %s436_s6 = scalar_lea.vmem %s435_s5, 1536  ;;  %p437_p4 = scmp.lt.s32.totalorder %s625_s8, %s435_s5 }
  0x34   : > { %p432_p2 = pnand %p430_p10, %p418_p5  ;;  %p438_p11 = scmp.lt.s32.totalorder %s436_s6, %s429_s27 }
  0x36   : > { %p433_p0 = pneg %p432_p2  ;;  %p439_p6 = por %p438_p11, %p437_p4 }
  0x38   : > { %p440_p13 = pnand %p439_p6, %p433_p0 }
  0x3a   : > { %443 = shalt.err (!%p440_p13)
}
  0x3b   : > { %s516_s7 = smov 384   ;;  %s517_s14 = smov 24  }
  0x3c   : > { %344 = dma.hbm_to_vmem [thread:$0]  (!%p613_p3), %s630_s17, 768, %s625_s8, %s632_s19, %s516_s7, %s516_s7, %s517_s14  }
  0x3d   : > { %p732_p5 = scmp.ne.s32.totalorder %s728_s23, 0 }
  0x3e   : > { %s656_s16 = sand.u32 (!%p732_p5), 1, %s504_s10   ;;  %p733_p6 = scmp.ne.s32.totalorder (!%p732_p5), %s725_s20, 0 }
  0x3f   : > { %145 = sbr.rel (%p732_p5) target bundleno = 98 (0x62), region = 28  ;;  %s148_s25 = scalar_lea.sflag (!%p732_p5), [#allocation3], %s656_s16 }
  0x40   : > { %s327_s24 = smul.u32 (!%p732_p5), 48, %s656_s16 }
  0x42   : > { %s151_s26 = scalar_lea.vmem (!%p732_p5), [#allocation2], %s327_s24 }
  0x44   : > { %487 = dma.done.wait (%p733_p6), %s148_s25, 768  }
  0x45   : > { %489 = vsyncadd (%p733_p6), %s148_s25, 4294966528  ;;  %p734_p13 = scmp.eq.s32.totalorder %s557_s13, 0 }
  0x47   : > { %491 = dma.done.wait (%p734_p13), [#allocation6], 48   ;;  %p735_p3 = pmov %p734_p13 }
  0x48   : > { %v186_v0 = vlaneseq  ;;  %v178_v5 = vld [vmem:[%s151_s26] sm:$0xff]  ;;  %s175_s23 = scalar_lea.vmem [#allocation7], %s327_s24  ;;  %v179_v7 = vld [vmem:[%s151_s26 + $0x8] sm:$0xff]  ;;  %s328_s8 = smul.u32 768, %s557_s13  ;;  %v180_v10 = vld [vmem:[%s151_s26 + $0x10] sm:$0xff] }
  0x49   : > { %493 = vsyncadd (%p735_p3), [#allocation6], 4294967248  ;;  %v184_v6 = vld [vmem:[#allocation5] sm:$0x7]  ;;  %s228_s28 = sshll.u32 %s175_s23, 4  ;;  %v181_v12 = vld [vmem:[%s151_s26 + $0x18] sm:$0xff]  ;;  %s669_s28 = int_to_ptr.vmem [resolvable:$true] %s228_s28 }
  0x4a   : > { %v187_v1 = vshrl.u32 %v186_v0, 7  ;;  %v182_v13 = vld [vmem:[%s151_s26 + $0x20] sm:$0xff]  ;;  %v183_v14 = vld [vmem:[%s151_s26 + $0x28] sm:$0xff]  ;;  %s674_s17 = scalar_lea.hbm %s719_s2, %s328_s8  ;;  %s214_s19 = scalar_lea.sflag [#allocation4], %s656_s16 }
  0x4b   : > { %s444_s29 = scalar_lea.vmem %s669_s28, 768  ;;  %p736_p1 = scmp.ne.s32.totalorder %s726_s21, 0 }
  0x4c   : > { %v188_v2 = vsub.s32 0, %v187_v1  ;;  %v192_v3 = vsub.s32 1, %v187_v1  ;;  %v196_v4 = vsub.s32 2, %v187_v1  ;;  %p445_p12 = scmp.ne.s32.totalorder %s669_s28, %s444_s29  ;;  %s518_s30 = smov [#allocation7]  }
  0x4d   : > { %s448_s3 = sshll.u32 %s518_s30, 4  ;;  %s449_s3 = int_to_ptr.vmem [resolvable:$false] %s448_s3 }
  0x4e   : > { %v189_v8 = vrot.slane %v184_v6, %v188_v2  ;;  %v193_v9 = vrot.slane %v184_v6, %v192_v3  ;;  %v197_v11 = vrot.slane %v184_v6, %v196_v4  ;;  %p446_p7 = pnand %p445_p12, %p736_p1  ;;  %s450_s27 = scalar_lea.vmem %s449_s3, 1536 }
  0x4f   : > { %p451_p9 = scmp.lt.s32.totalorder %s669_s28, %s449_s3  ;;  %p452_p10 = scmp.lt.s32.totalorder %s450_s27, %s444_s29 }
  0x50   : > { %v201_v15 = vadd.f32 %v189_v8, %v178_v5  ;;  %v202_v16 = vadd.f32 %v193_v9, %v179_v7  ;;  %v203_v17 = vadd.f32 %v197_v11, %v180_v10  ;;  %v204_v18 = vadd.f32 %v189_v8, %v181_v12  ;;  %p447_p8 = pneg %p446_p7 }
  0x51   : > { %v205_v19 = vadd.f32 %v193_v9, %v182_v13  ;;  %v206_v20 = vadd.f32 %v197_v11, %v183_v14  ;;  %p453_p2 = por %p452_p10, %p451_p9 }
  0x52   : > { %207 = vst [vmem:[%s175_s23] sm:$0xff] %v201_v15  ;;  %208 = vst [vmem:[%s175_s23 + $0x8] sm:$0xff] %v202_v16 }
  0x53   : > { %209 = vst [vmem:[%s175_s23 + $0x10] sm:$0xff] %v203_v17  ;;  %210 = vst [vmem:[%s175_s23 + $0x18] sm:$0xff] %v204_v18  ;;  %p454_p0 = pnand %p453_p2, %p447_p8 }
  0x54   : > { %211 = vst [vmem:[%s175_s23 + $0x20] sm:$0xff] %v205_v19  ;;  %212 = vst [vmem:[%s175_s23 + $0x28] sm:$0xff] %v206_v20 }
  0x55   : > { %457 = shalt.err (!%p454_p0)
}
  0x56   : > { %s458_s4 = scalar_lea.hbm %s674_s17, 768  ;;  %s462_s7 = scalar_lea.hbm %s719_s2, 1536 }
  0x57   : > { %p459_p4 = scmp.ne.s32.totalorder %s674_s17, %s458_s4  ;;  %p463_p6 = scmp.lt.s32.totalorder %s674_s17, %s719_s2 }
  0x58   : > { %p464_p13 = scmp.lt.s32.totalorder %s462_s7, %s458_s4 }
  0x59   : > { %p460_p11 = pnand %p459_p4, %p736_p1 }
  0x5a   : > { %p465_p3 = por %p464_p13, %p463_p6 }
  0x5b   : > { %p461_p5 = pneg %p460_p11 }
  0x5d   : > { %p466_p12 = pnand %p465_p3, %p461_p5 }
  0x5f   : > { %469 = shalt.err (!%p466_p12)
}
  0x60   : > { %s519_s25 = smov 384   ;;  %s520_s26 = smov 24  }
  0x61   : > { %335 = dma.vmem_to_hbm [thread:$0]  (%p736_p1), %s669_s28, 768, %s674_s17, %s214_s19, %s519_s25, %s519_s25, %s520_s26  }
  0x62 PF: > { %s243_s23 = sand.u32 1, %s500_s9   ;;  %p737_p7 = scmp.ne.s32.totalorder %s727_s22, 0 }
  0x63   : > { %p738_p8 = scmp.ge.s32.totalorder %s512_s12, 2  ;;  %s244_s8 = scalar_lea.sflag [#allocation4], %s243_s23 }
  0x65   : > { %p346_p9 = pnand %p738_p8, %p737_p7 }
  0x67   : > { %p347_p10 = pneg %p346_p9 }
  0x69   : > { %495 = dma.done.wait (%p347_p10), %s244_s8, 768  }
  0x6a   : > { %497 = vsyncadd (%p347_p10), %s244_s8, 4294966528  ;;  %p16_p2 = scmp.ge.s32.totalorder %s561_s15, 4   ;;  %s739_s9 = smov %s504_s10 }
  0x6b   : > { %s740_s10 = smov %s508_s11  ;;  %s741_s11 = smov %s573_s18 }
  0x6c   : > { %s742_s12 = smov %s561_s15  ;;  %18 = sbr.rel (!%p16_p2) target bundleno = 6 (0x6), region = 77 }
  0x71   :  { %249 = vsyncpa [#allocation3], 1 }
  0x72   :  { %251 = vsyncpa [#allocation3 + $0x1], 1 }
  0x73   :  { %252 = vsyncpa [#allocation6], 1 }
  0x74   :  { %253 = vsyncpa [#allocation4], 1 }
  0x75   :  { %255 = vsyncpa [#allocation4 + $0x1], 1 }

</bundles_post_ra>
